<compile_context>
chip_gen: v7x
topology: tpu7x:2x2x1
jax: 0.10.0
libtpu: 0.0.40
codegen_flags: <defaults>
</compile_context>

<pallas_src>
import functools

import jax
import jax.numpy as jnp
from jax.experimental import pallas as pl
from jax.experimental.pallas import tpu as pltpu


LANE = 128                              # lane width: pad MXU output dim to this
TB_CAP = 8192                           # hard cap on batch rows per grid step
VMEM_TILE_BUDGET = 12 * 1024 * 1024     # target bytes for double-buffered x/out tiles
VMEM_LIMIT_BYTES = 32 * 1024 * 1024     # explicit scoped-VMEM limit (v5e default is 16 MiB)


def _round_up(n, m):
    return ((n + m - 1) // m) * m


def mlp_kernel(x_ref, w1_ref, b1_ref, w2_ref, b2_ref, w3_ref, b3_ref, o_ref,
               *, num_classes, compute_dtype):
    """Fused Linear->ReLU->Linear->ReLU->Linear.

    x is streamed in f32 and cast to the MXU dtype on the VPU (free slot);
    matmuls accumulate in f32 on the MXU; only the first `num_classes` columns
    of the lane-padded final matmul are stored (small HBM writeback stream).
    """
    x = x_ref[...].astype(compute_dtype)
    h = jnp.dot(x, w1_ref[...], preferred_element_type=jnp.float32) + b1_ref[...]
    h = jnp.maximum(h, 0.0).astype(compute_dtype)
    h = jnp.dot(h, w2_ref[...], preferred_element_type=jnp.float32) + b2_ref[...]
    h = jnp.maximum(h, 0.0).astype(compute_dtype)
    out = jnp.dot(h, w3_ref[...], preferred_element_type=jnp.float32) + b3_ref[...]
    o_ref[...] = out[:, :num_classes].astype(o_ref.dtype)


@functools.partial(jax.jit, static_argnames=("compute_dtype",))
def basic_embedding_forward(x, params, compute_dtype=jnp.bfloat16):
    """x: [batch, tensor_dim] float32 -> logits [batch, num_classes] float32."""
    w1, b1, w2, b2, w3, b3 = params
    batch, tensor_dim = x.shape
    hidden = w1.shape[1]
    num_classes = w3.shape[1]

    # Final-layer weights/bias zero-padded to a lane-dense 128-multiple for the
    # MXU; padded columns are never stored (kernel slices back to num_classes).
    n_pad = _round_up(num_classes, LANE)
    w3p = jnp.pad(w3, ((0, 0), (0, n_pad - num_classes)))
    b3p = jnp.pad(b3, ((0, 0), (0, n_pad - num_classes)))

    # Weights are tiny and DMA'd once (constant index_map) -> one-time cast is free.
    # x itself is NOT cast here; the kernel casts it (saves a full HBM pass).
    w1c = w1.astype(compute_dtype)
    w2c = w2.astype(compute_dtype)
    w3c = w3p.astype(compute_dtype)

    # Batch tile: as large as the VMEM budget allows (amortizes ~0.35 us/step grid
    # overhead), multiple of 16 (bf16 sublane packing), capped at TB_CAP.
    # VMEM row cost uses lane-padded widths (tiles are physically (8,128)-tiled).
    row_vmem = 2 * 4 * (_round_up(tensor_dim, LANE) + _round_up(num_classes, LANE))
    tb_cap = min(TB_CAP, max(16, (VMEM_TILE_BUDGET // row_vmem) // 16 * 16))
    rb = _round_up(batch, 16)
    tb = rb if rb <= tb_cap else tb_cap
    padded_batch = _round_up(batch, tb)
    xp = x if padded_batch == batch else jnp.pad(x, ((0, padded_batch - batch), (0, 0)))
    grid = (padded_batch // tb,)

    def resident(arr):
        # Weights/biases: same block every step -> DMA'd only once, stays in VMEM.
        # TODO(synk): pipeline_mode=pl.Buffered(1) would drop the (unused) second
        # buffer for these constant-index blocks; omitted since they total <20 KiB
        # at hidden=32 and single-buffer pipeline_mode is the riskier lowering path.
        return pl.BlockSpec(arr.shape, lambda i: (0, 0))

    flops = 2 * padded_batch * (tensor_dim * hidden + hidden * hidden + hidden * n_pad)
    bytes_accessed = (
        padded_batch * 4 * (tensor_dim + num_classes)                      # x read + out write
        + (w1c.size + w2c.size + w3c.size) * jnp.dtype(compute_dtype).itemsize
        + (b1.size + b2.size + b3p.size) * 4
    )

    out = pl.pallas_call(
        functools.partial(mlp_kernel, num_classes=num_classes,
                          compute_dtype=compute_dtype),
        out_shape=jax.ShapeDtypeStruct((padded_batch, num_classes), jnp.float32),
        grid=grid,
        in_specs=[
            pl.BlockSpec((tb, tensor_dim), lambda i: (i, 0)),   # streamed f32 x tiles
            resident(w1c), resident(b1),
            resident(w2c), resident(b2),
            resident(w3c), resident(b3p),
        ],
        # Block last dim == full array dim (num_classes) -> legal; writeback is
        # num_classes f32 per row instead of a 128-lane padded slab.
        out_specs=pl.BlockSpec((tb, num_classes), lambda i: (i, 0)),
        compiler_params=pltpu.CompilerParams(
            # TODO(synk): on v7x verify the batch grid actually splits across the
            # two TensorCores; switch to pltpu.CORE_PARALLEL (or a leading
            # num_cores grid axis / pl.core_map) if plain "parallel" does not.
            dimension_semantics=("parallel",),
            vmem_limit_bytes=VMEM_LIMIT_BYTES,
        ),
        cost_estimate=pl.CostEstimate(
            flops=flops, transcendentals=0, bytes_accessed=bytes_accessed
        ),
    )(xp, w1c, b1, w2c, b2, w3c, b3p)

    return out if padded_batch == batch else out[:batch]


def init_params(key, tensor_dim, num_classes, hidden=32):
    """Deterministic synthetic init (uniform, like torch's default scale)."""
    keys = jax.random.split(key, 6)

    def lin(kw, kb, fan_in, fan_out):
        bound = 1.0 / jnp.sqrt(float(fan_in))
        w = jax.random.uniform(kw, (fan_in, fan_out), jnp.float32, -bound, bound)
        b = jax.random.uniform(kb, (1, fan_out), jnp.float32, -bound, bound)
        return w, b

    w1, b1 = lin(keys[0], keys[1], tensor_dim, hidden)
    w2, b2 = lin(keys[2], keys[3], hidden, hidden)
    w3, b3 = lin(keys[4], keys[5], hidden, num_classes)
    return (w1, b1, w2, b2, w3, b3)


def reference_forward(x, params):
    w1, b1, w2, b2, w3, b3 = params
    h = jnp.maximum(x @ w1 + b1, 0.0)
    h = jnp.maximum(h @ w2 + b2, 0.0)
    return h @ w3 + b3


if __name__ == "__main__":
    tensor_dim = 16
    num_classes = 10
    batch = 8

    key = jax.random.PRNGKey(0)
    k_x, k_p = jax.random.split(key)
    x = jax.random.normal(k_x, (batch, tensor_dim), dtype=jnp.float32)
    params = init_params(k_p, tensor_dim, num_classes)

    ref = reference_forward(x, params)

    # f32 MXU-input path: tight-ish tolerance.
    logits_f32 = jax.block_until_ready(
        basic_embedding_forward(x, params, compute_dtype=jnp.float32)
    )
    assert logits_f32.shape == (batch, num_classes)
    assert jnp.allclose(logits_f32, ref, atol=1e-3, rtol=1e-3), float(
        jnp.max(jnp.abs(logits_f32 - ref))
    )

    # Default fast path (bf16 MXU inputs, f32 accumulation): looser tolerance.
    logits_bf16 = jax.block_until_ready(basic_embedding_forward(x, params))
    assert logits_bf16.shape == (batch, num_classes)
    assert jnp.allclose(logits_bf16, ref, atol=5e-2, rtol=5e-2), float(
        jnp.max(jnp.abs(logits_bf16 - ref))
    )

    print("KERNEL_OK")
</pallas_src>

<mosaic_0001>
module attributes {stable_mosaic.version = 11 : i64} {
  func.func @mlp_kernel(%arg0: i32, %arg1: memref<16x16xf32, #tpu.memory_space<vmem>>, %arg2: memref<16x32xf32, #tpu.memory_space<vmem>>, %arg3: memref<1x32xf32, #tpu.memory_space<vmem>>, %arg4: memref<32x32xf32, #tpu.memory_space<vmem>>, %arg5: memref<1x32xf32, #tpu.memory_space<vmem>>, %arg6: memref<32x128xf32, #tpu.memory_space<vmem>>, %arg7: memref<1x128xf32, #tpu.memory_space<vmem>>, %arg8: memref<16x10xf32, #tpu.memory_space<vmem>>) attributes {dimension_semantics = [#tpu.dimension_semantics<parallel>], iteration_bounds = array<i64: 1>, scalar_prefetch = 0 : i64, scratch_operands = 0 : i64, tpu.core_type = #tpu.core_type<tc>, window_params = [{transform_indices = @transform_0, window_bounds = array<i64: 16, 16>}, {pipeline_mode = #tpu.pipeline_mode<synchronous>, transform_indices = @transform_1, window_bounds = array<i64: 16, 32>}, {pipeline_mode = #tpu.pipeline_mode<synchronous>, transform_indices = @transform_2, window_bounds = array<i64: 1, 32>}, {pipeline_mode = #tpu.pipeline_mode<synchronous>, transform_indices = @transform_3, window_bounds = array<i64: 32, 32>}, {pipeline_mode = #tpu.pipeline_mode<synchronous>, transform_indices = @transform_4, window_bounds = array<i64: 1, 32>}, {pipeline_mode = #tpu.pipeline_mode<synchronous>, transform_indices = @transform_5, window_bounds = array<i64: 32, 128>}, {pipeline_mode = #tpu.pipeline_mode<synchronous>, transform_indices = @transform_6, window_bounds = array<i64: 1, 128>}, {transform_indices = @transform_7, window_bounds = array<i64: 16, 10>}]} {
    %c0 = arith.constant 0 : index
    %c0_0 = arith.constant 0 : index
    %0 = vector.load %arg1[%c0, %c0_0] : memref<16x16xf32, #tpu.memory_space<vmem>>, vector<16x16xf32>
    %c0_1 = arith.constant 0 : index
    %c0_2 = arith.constant 0 : index
    %1 = vector.load %arg2[%c0_1, %c0_2] : memref<16x32xf32, #tpu.memory_space<vmem>>, vector<16x32xf32>
    %cst = arith.constant dense<0.000000e+00> : vector<16x32xf32>
    %2 = tpu.matmul %0, %1, %cst {dimension_numbers = #tpu.dot_dimension_numbers<[1], [0], [0], [1], [0, 0, 1, 1], [], []>} : vector<16x16xf32>, vector<16x32xf32>, vector<16x32xf32> -> vector<16x32xf32>
    %c0_3 = arith.constant 0 : index
    %c0_4 = arith.constant 0 : index
    %3 = vector.load %arg3[%c0_3, %c0_4] : memref<1x32xf32, #tpu.memory_space<vmem>>, vector<1x32xf32>
    %4 = vector.broadcast %3 : vector<1x32xf32> to vector<16x32xf32>
    %5 = arith.addf %2, %4 : vector<16x32xf32>
    %cst_5 = arith.constant 0.000000e+00 : f32
    %6 = vector.broadcast %cst_5 : f32 to vector<16x32xf32>
    %7 = arith.maximumf %5, %6 : vector<16x32xf32>
    %c0_6 = arith.constant 0 : index
    %c0_7 = arith.constant 0 : index
    %8 = vector.load %arg4[%c0_6, %c0_7] : memref<32x32xf32, #tpu.memory_space<vmem>>, vector<32x32xf32>
    %cst_8 = arith.constant dense<0.000000e+00> : vector<16x32xf32>
    %9 = tpu.matmul %7, %8, %cst_8 {dimension_numbers = #tpu.dot_dimension_numbers<[1], [0], [0], [1], [0, 0, 1, 1], [], []>} : vector<16x32xf32>, vector<32x32xf32>, vector<16x32xf32> -> vector<16x32xf32>
    %c0_9 = arith.constant 0 : index
    %c0_10 = arith.constant 0 : index
    %10 = vector.load %arg5[%c0_9, %c0_10] : memref<1x32xf32, #tpu.memory_space<vmem>>, vector<1x32xf32>
    %11 = vector.broadcast %10 : vector<1x32xf32> to vector<16x32xf32>
    %12 = arith.addf %9, %11 : vector<16x32xf32>
    %cst_11 = arith.constant 0.000000e+00 : f32
    %13 = vector.broadcast %cst_11 : f32 to vector<16x32xf32>
    %14 = arith.maximumf %12, %13 : vector<16x32xf32>
    %c0_12 = arith.constant 0 : index
    %c0_13 = arith.constant 0 : index
    %15 = vector.load %arg6[%c0_12, %c0_13] : memref<32x128xf32, #tpu.memory_space<vmem>>, vector<32x128xf32>
    %cst_14 = arith.constant dense<0.000000e+00> : vector<16x128xf32>
    %16 = tpu.matmul %14, %15, %cst_14 {dimension_numbers = #tpu.dot_dimension_numbers<[1], [0], [0], [1], [0, 0, 1, 1], [], []>} : vector<16x32xf32>, vector<32x128xf32>, vector<16x128xf32> -> vector<16x128xf32>
    %c0_15 = arith.constant 0 : index
    %c0_16 = arith.constant 0 : index
    %17 = vector.load %arg7[%c0_15, %c0_16] : memref<1x128xf32, #tpu.memory_space<vmem>>, vector<1x128xf32>
    %18 = vector.broadcast %17 : vector<1x128xf32> to vector<16x128xf32>
    %19 = arith.addf %16, %18 : vector<16x128xf32>
    %20 = vector.extract_strided_slice %19 {offsets = [0, 0], sizes = [16, 10], strides = [1, 1]} : vector<16x128xf32> to vector<16x10xf32>
    %c0_17 = arith.constant 0 : index
    %c0_18 = arith.constant 0 : index
    %21 = vector.load %arg8[%c0_17, %c0_18] : memref<16x10xf32, #tpu.memory_space<vmem>>, vector<16x10xf32>
    tpu.vector_store %arg8[%c0_17, %c0_18], %20 {strides = array<i32>} : memref<16x10xf32, #tpu.memory_space<vmem>>, vector<16x10xf32>,
    return
  }
  func.func @transform_0(%arg0: i32) -> (i32, i32) {
    %c0_i32 = arith.constant 0 : i32
    %c0_i32_0 = arith.constant 0 : i32
    return %arg0, %c0_i32 : i32, i32
  }
  func.func @transform_1(%arg0: i32) -> (i32, i32) {
    %c0_i32 = arith.constant 0 : i32
    %c0_i32_0 = arith.constant 0 : i32
    %c0_i32_1 = arith.constant 0 : i32
    return %c0_i32, %c0_i32_0 : i32, i32
  }
  func.func @transform_2(%arg0: i32) -> (i32, i32) {
    %c0_i32 = arith.constant 0 : i32
    %c0_i32_0 = arith.constant 0 : i32
    %c0_i32_1 = arith.constant 0 : i32
    return %c0_i32, %c0_i32_0 : i32, i32
  }
  func.func @transform_3(%arg0: i32) -> (i32, i32) {
    %c0_i32 = arith.constant 0 : i32
    %c0_i32_0 = arith.constant 0 : i32
    %c0_i32_1 = arith.constant 0 : i32
    return %c0_i32, %c0_i32_0 : i32, i32
  }
  func.func @transform_4(%arg0: i32) -> (i32, i32) {
    %c0_i32 = arith.constant 0 : i32
    %c0_i32_0 = arith.constant 0 : i32
    %c0_i32_1 = arith.constant 0 : i32
    return %c0_i32, %c0_i32_0 : i32, i32
  }
  func.func @transform_5(%arg0: i32) -> (i32, i32) {
    %c0_i32 = arith.constant 0 : i32
    %c0_i32_0 = arith.constant 0 : i32
    %c0_i32_1 = arith.constant 0 : i32
    return %c0_i32, %c0_i32_0 : i32, i32
  }
  func.func @transform_6(%arg0: i32) -> (i32, i32) {
    %c0_i32 = arith.constant 0 : i32
    %c0_i32_0 = arith.constant 0 : i32
    %c0_i32_1 = arith.constant 0 : i32
    return %c0_i32, %c0_i32_0 : i32, i32
  }
  func.func @transform_7(%arg0: i32) -> (i32, i32) {
    %c0_i32 = arith.constant 0 : i32
    %c0_i32_0 = arith.constant 0 : i32
    return %arg0, %c0_i32 : i32, i32
  }
}

</mosaic_0001>

<bundles_post_ra>
// kernel: basic_embedding_forward.1
= control target key start
LH: loop header
LB: loop body
LE: loop exit
PB: predicated region body
PF: predicated region fallthrough
CT: control target
= control target key end

     0   :  { %vm37_vm0 = vcmask 130048   ;;  %vm132_vm1 = vcmask 261120   ;;  %vm308_vm2 = vcmask 80896   ;;  %s484_s1 = inlined_call_operand.vmem [shape: f32[16,32], index: 1, kind: input, shape index: {}]   ;;  %s485_s0 = inlined_call_operand.vmem [shape: f32[16,16], index: 0, kind: input, shape index: {}]   ;;  %s486_s3 = inlined_call_operand.vmem [shape: f32[32,32], index: 3, kind: input, shape index: {}]   ;;  %s487_s5 = inlined_call_operand.vmem [shape: f32[32,128], index: 5, kind: input, shape index: {}]   ;;  %s488_s2 = inlined_call_operand.vmem [shape: f32[1,32], index: 2, kind: input, shape index: {}]   ;;  %s489_s4 = inlined_call_operand.vmem [shape: f32[1,32], index: 4, kind: input, shape index: {}]   ;;  %s490_s6 = inlined_call_operand.vmem [shape: f32[1,128], index: 6, kind: input, shape index: {}]   ;;  %s491_s7 = inlined_call_operand.vmem [shape: f32[16,10], index: 7, kind: output, shape index: {}]  }
   0x1   :  { %v28_v0 = vld [vmem:[%s484_s1] sm:$0xff]  ;;  %v29_v1 = vld [vmem:[%s484_s1 + $0x8] sm:$0xff]  ;;  %v123_v8 = vld [vmem:[%s486_s3 + $0x10] sm:$0xff] }
   0x2   :  { %v26_v2 = vld [vmem:[%s485_s0] sm:$0xff]  ;;  %v369_v3 = vpack.c.bf16 %v29_v1, %v28_v0  ;;  %v122_v5 = vld [vmem:[%s486_s3 + $0x8] sm:$0xff]  ;;  %v124_v9 = vld [vmem:[%s486_s3 + $0x18] sm:$0xff] }
   0x3   :  { %344 = vmatprep.mubr.msk.f32.mxu0 %vm37_vm0, %v26_v2  ;;  %v121_v4 = vld [vmem:[%s486_s3] sm:$0xff]  ;;  %v27_v7 = vld [vmem:[%s485_s0 + $0x8] sm:$0xff]  ;;  %v377_v10 = vpack.c.bf16 %v124_v9, %v123_v8  ;;  %v218_v21 = vld [vmem:[%s487_s5 + $0x10] sm:$0xff] }
   0x4   :  { %v373_v6 = vpack.c.bf16 %v122_v5, %v121_v4  ;;  %370 = vmatprep.subr.bf16.mxu0 %v369_v3  ;;  %v216_v11 = vld [vmem:[%s487_s5] sm:$0xff]  ;;  %v217_v12 = vld [vmem:[%s487_s5 + $0x8] sm:$0xff]  ;;  %v219_v22 = vld [vmem:[%s487_s5 + $0x18] sm:$0xff] }
   0x5   :  { %372 = vmatpush3.bf16.msra.mxu0 %v369_v3  ;;  %v381_v13 = vpack.c.bf16 %v217_v12, %v216_v11  ;;  %v315_v14 = vld [vmem:[%s488_s2] ss:$0 sm:$0xff]  ;;  %v385_v23 = vpack.c.bf16 %v219_v22, %v218_v21 }
   0x6   :  { %374 = vmatprep.subr.bf16.mxu1 %v373_v6  ;;  %v318_v24 = vld [vmem:[%s489_s4] ss:$0 sm:$0xff] }
   0x7   :  { %376 = vmatpush3.bf16.msra.mxu1 %v373_v6  ;;  %382 = vmatprep.subr.bf16.mxu0 %v381_v13  ;;  %v321_v31 = vld [vmem:[%s490_s6] ss:$0 sm:$0xff] }
   0x8   :  { %345 = vmatmul.mubr.msk.f32.vlgmr.msra.gmra.mrb[0].mxu0 %vm37_vm0, %v27_v7  ;;  %378 = vmatprep.subr.bf16.mxu1 %v377_v10 }
   0x9   :  { %384 = vmatpush3.bf16.msra.mxu0 %v381_v13 }
   0xa   :  { %386 = vmatprep.subr.bf16.mxu0 %v385_v23 }
   0xb   :  { %380 = vmatpush3.bf16.msra.mxu1 %v377_v10 }
   0xd   :  { %388 = vmatpush3.bf16.msra.mxu0 %v385_v23 }
  0xdb   :  { %v346_v15 = vpop.f32.mrb[0].mxu0 }
  0xdc   :  { %v116_v16 = vadd.f32 %v346_v15, %v315_v14  ;;  %v110_v17 = vpop.f32.mrb[1].mxu0 }
  0xdd   :  { %v111_v18 = vadd.f32 %v315_v14, %v110_v17 }
  0xde   :  { %v120_v20 = vmax.f32 %v116_v16, 0.0 }
  0xdf   :  { %v119_v19 = vmax.f32 %v111_v18, 0.0 }
  0xe1   :  { %355 = vmatprep.mubr.msk.f32.mxu1 %vm132_vm1, %v119_v19 }
  0xe2   :  { %356 = vmatmul.mubr.msk.f32.vlgmr.msra.gmra.mrb[0].mxu1 %vm132_vm1, %v120_v20 }
 0x1b5   :  { %v357_v25 = vpop.f32.mrb[0].mxu1 }
 0x1b6   :  { %v211_v26 = vadd.f32 %v357_v25, %v318_v24  ;;  %v205_v27 = vpop.f32.mrb[1].mxu1 }
 0x1b7   :  { %v206_v28 = vadd.f32 %v318_v24, %v205_v27 }
 0x1b8   :  { %v215_v30 = vmax.f32 %v211_v26, 0.0 }
 0x1b9   :  { %v214_v29 = vmax.f32 %v206_v28, 0.0 }
 0x1bb   :  { %366 = vmatprep.mubr.msk.f32.mxu0 %vm132_vm1, %v214_v29 }
 0x1bc   :  { %367 = vmatmul.mubr.msk.f32.vlgmr.msra.gmra.mrb[2].mxu0 %vm132_vm1, %v215_v30 }
 0x28f   :  { %v368_v32 = vpop.f32.mrb[2].mxu0 }
 0x290   :  { %v305_v33 = vadd.f32 %v368_v32, %v321_v31  ;;  %v299_v34 = vpop.f32.mrb[3].mxu0 }
 0x291   :  { %v300_v35 = vadd.f32 %v321_v31, %v299_v34 }
 0x292   :  { %310 = vst.msk [vmem:[%s491_s7 + $0x8] sm:$0xff] %vm308_vm2, %v305_v33 }
 0x293   :  { %309 = vst.msk [vmem:[%s491_s7] sm:$0xff] %vm308_vm2, %v300_v35 }

</bundles_post_ra>
